<compile_context>
chip_gen: v6e
topology: v6e:2x2x1
jax: 0.10.0
libtpu: 0.0.40
codegen_flags: <defaults>
</compile_context>

<pallas_src>
import math
from functools import partial

import jax
import jax.numpy as jnp
import numpy as np
from jax.experimental import pallas as pl
from jax.experimental.pallas import tpu as pltpu


# ------------------------------ small helpers --------------------------------

def _spike(x):
    # MultiSpike: round(clamp(x, 0, 4)) / 4   (Norm == max_value == 4)
    return jnp.round(jnp.clip(x, 0.0, 4.0)) * 0.25


_ROLL_MATCHES_NUMPY = None


def _roll_matches_numpy():
    """True iff pltpu.roll(x, s, axis) == np.roll(x, s, axis) on this backend.

    Decided once with a tiny probe kernel run eagerly (outside jit), so the
    tap -> roll-shift mapping below is correct regardless of the sign
    convention of the underlying rotate op."""
    global _ROLL_MATCHES_NUMPY
    if _ROLL_MATCHES_NUMPY is None:
        def probe(x_ref, o_ref):
            o_ref[...] = pltpu.roll(x_ref[...], 1, axis=0)

        x = np.arange(8 * 128, dtype=np.float32).reshape(8, 128)
        y = np.asarray(pl.pallas_call(
            probe, out_shape=jax.ShapeDtypeStruct((8, 128), jnp.float32),
        )(jnp.asarray(x)))
        if np.array_equal(y, np.roll(x, 1, axis=0)):
            _ROLL_MATCHES_NUMPY = True
        elif np.array_equal(y, np.roll(x, -1, axis=0)):
            _ROLL_MATCHES_NUMPY = False
        else:
            raise RuntimeError("unexpected pltpu.roll semantics")
    return _ROLL_MATCHES_NUMPY


def _pad_indicator(H, W):
    """(N, 9) float32; 1 where the 3x3 tap of that pixel reads the pad ring."""
    N = H * W
    pad = np.zeros((N, 9), np.float32)
    for t in range(9):
        oy, ox = t // 3 - 1, t % 3 - 1
        for i in range(H):
            for j in range(W):
                if not (0 <= i + oy < H and 0 <= j + ox < W):
                    pad[i * W + j, t] = 1.0
    return pad


def _tap_roll_shifts(W, n_rows, matches_np):
    """Static (tap, pltpu.roll shift) pairs realizing rolled[r] = y[r + s_t]."""
    shifts = []
    for t in range(9):
        if t == 4:
            continue                               # center tap: no roll needed
        s = (t // 3 - 1) * W + (t % 3 - 1)
        amt = (-s) % n_rows if matches_np else s % n_rows
        shifts.append((t, int(amt)))
    return tuple(shifts)


# ------------------------------- kernel body ---------------------------------

def _repconv(xs, w1_ref, wd_ref, aff_ref, pc_ref, w2_ref, mask_ref,
             y1_scr, acc_scr, *, Cm, tap_shifts):
    """RepConv + trailing BN on an (M, Cin) spiked activation (values only).

    aff rows: [s1, t1, s2, t2] (BN1 affine; fused BN2*outer-BN affine).
    pc:       precomputed pad-border contribution of the 3x3 depthwise conv.
    mask:     (M, 9) tap-validity; invalid taps come from the pad ring (pc).
    The depthwise taps are realized with pltpu.roll along the row axis; rolls
    that cross image boundaries are always masked out.  y1/acc stream through
    VMEM scratch so the tap loop never holds 3 full f32 tiles in vregs."""
    aff = aff_ref[...]                                           # (4, Cm)

    # first 1x1 conv on the MXU; the spiked input is exact in bf16.
    y1 = jnp.dot(xs.astype(jnp.bfloat16), w1_ref[...],
                 preferred_element_type=jnp.float32)             # (M, Cm)
    y1_scr[:, 0:Cm] = y1 * aff[0:1, :] + aff[1:2, :]             # BN1 affine

    # depthwise 3x3 over the BN-padded map: center tap + 8 rolled taps
    # (masked), plus the constant border term.
    wd = wd_ref[...]                                             # (9, Cm)
    acc_scr[:, 0:Cm] = pc_ref[...] + y1_scr[:, 0:Cm] * wd[4:5, :]
    for t, amt in tap_shifts:
        rolled = pltpu.roll(y1_scr[:, 0:Cm], amt, axis=0)        # XLU, not MXU
        acc_scr[:, 0:Cm] += (rolled * wd[t:t + 1, :]) * mask_ref[:, t:t + 1]

    # second 1x1 conv + fused (inner BN o outer BN) affine.
    y2 = jnp.dot(acc_scr[:, 0:Cm], w2_ref[...],
                 preferred_element_type=jnp.float32)
    return y2 * aff[2:3, :] + aff[3:4, :]


def _fused_kernel(x_ref, mask_ref, hm_ref,
                  w1_qkv_ref, wd_qkv_ref, aff_qkv_ref, pc_qkv_ref, w2_qkv_ref,
                  w1_p_ref, wd_p_ref, aff_p_ref, pc_p_ref, w2_p_ref,
                  o_ref, y1_scr, acc_scr, *, C, N, Bt, tap_shifts):
    xs = _spike(x_ref[0])                                        # head_spike (M, C)

    # merged q/k/v RepConv (+BN) followed by the q/k/v spikes.
    qkv = _spike(_repconv(xs, w1_qkv_ref, wd_qkv_ref, aff_qkv_ref,
                          pc_qkv_ref, w2_qkv_ref, mask_ref,
                          y1_scr, acc_scr, Cm=3 * C,
                          tap_shifts=tap_shifts))                # (M, 3C)
    q = qkv[:, 0:C]
    k = qkv[:, C:2 * C].astype(jnp.bfloat16)                     # spikes exact in bf16
    v = qkv[:, 2 * C:3 * C].astype(jnp.bfloat16)

    # linear attention, per packed image: kv = k^T v over full channels,
    # masked to the per-head block diagonal with the scale folded in (hm),
    # then q @ kv.
    hm = hm_ref[...]                                             # (C, C) mask*scale
    parts = []
    for b in range(Bt):
        r0 = b * N
        kv = jax.lax.dot_general(k[r0:r0 + N, :], v[r0:r0 + N, :],
                                 (((0,), (0,)), ((), ())),
                                 preferred_element_type=jnp.float32)  # (C, C)
        parts.append(jnp.dot(q[r0:r0 + N, :], kv * hm,
                             preferred_element_type=jnp.float32))     # (N, C)
    attn = parts[0] if Bt == 1 else jnp.concatenate(parts, axis=0)

    a = _spike(attn)                                             # attn_spike
    o_ref[0] = _repconv(a, w1_p_ref, wd_p_ref, aff_p_ref, pc_p_ref,
                        w2_p_ref, mask_ref, y1_scr, acc_scr,
                        Cm=C, tap_shifts=tap_shifts)             # proj conv


# --------------------------- parameter preparation ---------------------------

def init_branch_params(key, C, eps=1e-5):
    """One RepConv + trailing BatchNorm2d branch, BNs folded to scale/shift."""
    ks = jax.random.split(key, 6)

    def bn(k):
        kg, kb, km, kvr = jax.random.split(k, 4)
        gamma = 1.0 + 0.2 * jax.random.normal(kg, (C,), jnp.float32)
        beta = 0.1 * jax.random.normal(kb, (C,), jnp.float32)
        mean = 0.1 * jax.random.normal(km, (C,), jnp.float32)
        var = jax.random.uniform(kvr, (C,), jnp.float32, 0.5, 1.5)
        s = gamma / jnp.sqrt(var + eps)
        return s, beta - mean * s

    w1 = jax.random.normal(ks[0], (C, C), jnp.float32) / math.sqrt(C)
    wd = jax.random.normal(ks[1], (9, C), jnp.float32) / 3.0
    w2 = jax.random.normal(ks[2], (C, C), jnp.float32) / math.sqrt(C)
    s1, t1 = bn(ks[3])           # BNAndPadLayer BN (pad value == t1)
    s2a, t2a = bn(ks[4])         # BN at the end of RepConv
    s2b, t2b = bn(ks[5])         # outer BatchNorm2d
    return {'w1': w1, 'wd': wd, 'w2': w2,
            's1': s1, 't1': t1,
            's2': s2b * s2a, 't2': s2b * t2a + t2b}


def prepare_fused_params(params, H, W):
    """Merge q/k/v branches, precompute pad-border / tap-validity constants,
    and cast the first 1x1 weights to bf16 (their operand is bf16-exact)."""
    C = params['q']['w1'].shape[0]
    PAD = _pad_indicator(H, W)                         # (N, 9)
    _roll_matches_numpy()                              # run the probe outside jit

    def pack(names):
        cat = lambda key: jnp.concatenate([params[n][key] for n in names],
                                          axis=-1)
        w1, wd = cat('w1'), cat('wd')                  # (C, Cm), (9, Cm)
        s1, t1, s2, t2 = cat('s1'), cat('t1'), cat('s2'), cat('t2')
        Cm = w1.shape[1]
        w2 = jnp.zeros((Cm, Cm), jnp.float32)          # block-diag second 1x1
        for i, n in enumerate(names):
            w2 = w2.at[i * C:(i + 1) * C, i * C:(i + 1) * C].set(params[n]['w2'])
        pc = jnp.asarray((PAD.astype(np.float64) @ np.asarray(wd, np.float64))
                         * np.asarray(t1, np.float64)[None, :],
                         dtype=jnp.float32)            # (N, Cm) border term
        return {'w1': w1.astype(jnp.bfloat16), 'wd': wd,
                'aff': jnp.stack([s1, t1, s2, t2]),    # (4, Cm)
                'pc': pc, 'w2': w2}

    return {'mask': jnp.asarray(1.0 - PAD, jnp.float32),   # (N, 9) valid-tap mask
            'qkv': pack(['q', 'k', 'v']),
            'proj': pack(['proj'])}


def _pick_bt(B, N, target_rows=256):
    """Images packed per grid step so matmul M ~= 256 (128 still fine on v5e)."""
    bt = 1
    for cand in range(1, B + 1):
        if B % cand == 0 and cand * N <= target_rows:
            bt = cand
    return bt


# --------------------------------- forward -----------------------------------

def ms_attention_forward_tokens(x_bnc, fused, *, num_heads, H, W):
    """Token-level entry point: x (B, N, C) float32 -> (B, N, C) float32."""
    B, N, C = x_bnc.shape
    assert N == H * W
    hd = C // num_heads
    scale = float(hd) ** -0.5
    C3 = 3 * C

    Bt = _pick_bt(B, N)
    G = B // Bt
    M = Bt * N

    tap_shifts = _tap_roll_shifts(W, M, _roll_matches_numpy())

    # per-step constants (tiled per packed image where row-indexed).
    mask = jnp.tile(fused['mask'], (Bt, 1))                       # (M, 9)
    pc_qkv = jnp.tile(fused['qkv']['pc'], (Bt, 1))                # (M, 3C)
    pc_p = jnp.tile(fused['proj']['pc'], (Bt, 1))                 # (M, C)
    hm = jnp.asarray((np.arange(C)[:, None] // hd ==
                      np.arange(C)[None, :] // hd).astype(np.float32) * scale)

    xg = x_bnc.reshape(G, M, C).astype(jnp.float32)

    def const(shape):
        return pl.BlockSpec(shape, lambda g, _n=len(shape): (0,) * _n)

    grid_spec = pltpu.PrefetchScalarGridSpec(
        num_scalar_prefetch=0,
        grid=(G,),
        in_specs=[
            pl.BlockSpec((1, M, C), lambda g: (g, 0, 0)),   # x (packed images)
            const((M, 9)),                                  # tap-validity mask
            const((C, C)),                                  # head mask * scale
            const((C, C3)), const((9, C3)), const((4, C3)), # qkv: w1, wd, aff
            const((M, C3)), const((C3, C3)),                # qkv: pad-corr, w2
            const((C, C)), const((9, C)), const((4, C)),    # proj: w1, wd, aff
            const((M, C)), const((C, C)),                   # proj: pad-corr, w2
        ],
        out_specs=pl.BlockSpec((1, M, C), lambda g: (g, 0, 0)),
        scratch_shapes=[pltpu.VMEM((M, C3), jnp.float32),   # y1 stream buffer
                        pltpu.VMEM((M, C3), jnp.float32)],  # acc stream buffer
    )

    out = pl.pallas_call(
        partial(_fused_kernel, C=C, N=N, Bt=Bt, tap_shifts=tap_shifts),
        out_shape=jax.ShapeDtypeStruct((G, M, C), jnp.float32),
        grid_spec=grid_spec,
        compiler_params=pltpu.CompilerParams(
            dimension_semantics=("parallel",)),
    )(xg, mask, hm,
      fused['qkv']['w1'], fused['qkv']['wd'], fused['qkv']['aff'],
      pc_qkv, fused['qkv']['w2'],
      fused['proj']['w1'], fused['proj']['wd'], fused['proj']['aff'],
      pc_p, fused['proj']['w2'])

    return out.reshape(B, N, C)


def ms_attention_forward(x_nchw, fused, num_heads):
    """Module-compatible wrapper: x (B, C, H, W) float32 -> (B, C, H, W)."""
    B, C, H, W = x_nchw.shape
    N = H * W
    x = jnp.transpose(x_nchw, (0, 2, 3, 1)).reshape(B, N, C)
    out = ms_attention_forward_tokens(x, fused, num_heads=num_heads, H=H, W=W)
    return jnp.transpose(out.reshape(B, H, W, C), (0, 3, 1, 2))


# ------------------------------ jnp reference ---------------------------------

def _spike_ref(x):
    return jnp.round(jnp.clip(x, 0.0, 4.0)) * 0.25


def _repconv_ref(x, p):
    """x: (B, H, W, Cin) -> (B, H, W, Cout); mirrors the kernel's cast points."""
    B, H, W, _ = x.shape
    hi = jax.lax.Precision.HIGHEST
    y = jnp.einsum('bhwc,cd->bhwd', x.astype(jnp.bfloat16),
                   p['w1'].astype(jnp.bfloat16),
                   preferred_element_type=jnp.float32)
    y = y * p['s1'] + p['t1']
    Cm = y.shape[-1]
    pad = jnp.broadcast_to(p['t1'], (B, H + 2, W + 2, Cm))
    pad = pad.at[:, 1:H + 1, 1:W + 1, :].set(y)
    wd = p['wd'].reshape(3, 3, Cm)
    acc = jnp.zeros((B, H, W, Cm), jnp.float32)
    for dy in range(3):
        for dx in range(3):
            acc = acc + pad[:, dy:dy + H, dx:dx + W, :] * wd[dy, dx]
    y2 = jnp.einsum('bhwc,cd->bhwd', acc, p['w2'],
                    preferred_element_type=jnp.float32, precision=hi)
    return y2 * p['s2'] + p['t2']


def ms_attention_forward_ref(x_nchw, params, num_heads):
    B, C, H, W = x_nchw.shape
    N = H * W
    hd = C // num_heads
    scale = float(hd) ** -0.5
    hi = jax.lax.Precision.HIGHEST
    x = _spike_ref(jnp.transpose(x_nchw, (0, 2, 3, 1)).astype(jnp.float32))
    q = _spike_ref(_repconv_ref(x, params['q']))
    k = _spike_ref(_repconv_ref(x, params['k']))
    v = _spike_ref(_repconv_ref(x, params['v']))

    def heads(t):
        return t.reshape(B, N, num_heads, hd).transpose(0, 2, 1, 3)

    qh, kh, vh = heads(q), heads(k), heads(v)
    kv = jnp.einsum('bhnd,bhne->bhde', kh.astype(jnp.bfloat16),
                    vh.astype(jnp.bfloat16),
                    preferred_element_type=jnp.float32)
    a = jnp.einsum('bhnd,bhde->bhne', qh, kv,
                   preferred_element_type=jnp.float32, precision=hi) * scale
    a = _spike_ref(a.transpose(0, 2, 1, 3).reshape(B, H, W, C))
    out = _repconv_ref(a, params['proj'])
    return jnp.transpose(out, (0, 3, 1, 2))


# ----------------------------------- main -------------------------------------

if __name__ == "__main__":
    # dim=32, num_heads=8 -> head_dim=4, N=64; B=8 packs 4 images per grid step
    # (M=256 matmul rows) with a 2-step "parallel" grid for megacore.
    B, C, H, W = 8, 32, 8, 8
    num_heads = 8

    key = jax.random.PRNGKey(0)
    kx, kq, kk, kv_, kp = jax.random.split(key, 5)
    x = jax.random.uniform(kx, (B, C, H, W), jnp.float32, -1.0, 5.0)
    params = {'q': init_branch_params(kq, C),
              'k': init_branch_params(kk, C),
              'v': init_branch_params(kv_, C),
              'proj': init_branch_params(kp, C)}
    fused = prepare_fused_params(params, H, W)

    fwd = jax.jit(partial(ms_attention_forward, num_heads=num_heads))
    out = jax.block_until_ready(fwd(x, fused))
    assert out.shape == (B, C, H, W)
    assert bool(jnp.all(jnp.isfinite(out)))

    # Correctness vs a pure-JAX reference with matching cast points.  The
    # round() quantization inside MultiSpike can flip isolated elements by a
    # full 0.25 step under ~1e-6 numeric differences, so require near-total
    # (rather than bitwise) elementwise agreement.
    ref = np.asarray(ms_attention_forward_ref(x, params, num_heads))
    got = np.asarray(out)
    err = np.abs(got - ref)
    tol = 5e-3 + 5e-3 * np.abs(ref)
    frac_ok = float(np.mean(err <= tol))
    assert frac_ok >= 0.97, f"only {frac_ok:.4f} of outputs match the reference"

    print("KERNEL_OK")
</pallas_src>

<mosaic_0001>
module attributes {stable_mosaic.version = 11 : i64} {
  func.func @probe(%arg0: memref<8x128xf32, #tpu.memory_space<vmem>>, %arg1: memref<8x128xf32, #tpu.memory_space<vmem>>) attributes {dimension_semantics = [], scalar_prefetch = 0 : i64, scratch_operands = 0 : i64, tpu.core_type = #tpu.core_type<tc>} {
    %c0 = arith.constant 0 : index
    %c0_0 = arith.constant 0 : index
    %0 = vector.load %arg0[%c0, %c0_0] : memref<8x128xf32, #tpu.memory_space<vmem>>, vector<8x128xf32>
    %c1_i32 = arith.constant 1 : i32
    %1 = tpu.dynamic_rotate %0 by %c1_i32 dim 0 : vector<8x128xf32>, i32 -> vector<8x128xf32>
    %c0_1 = arith.constant 0 : index
    %c0_2 = arith.constant 0 : index
    %2 = vector.load %arg1[%c0_1, %c0_2] : memref<8x128xf32, #tpu.memory_space<vmem>>, vector<8x128xf32>
    tpu.vector_store %arg1[%c0_1, %c0_2], %1 {strides = array<i32>} : memref<8x128xf32, #tpu.memory_space<vmem>>, vector<8x128xf32>,
    return
  }
}

</mosaic_0001>

<bundles_post_ra>
// kernel: tpu_custom_call.1
= control target key start
LH: loop header
LB: loop body
LE: loop exit
PB: predicated region body
PF: predicated region fallthrough
CT: control target
= control target key end

     0   :  { %6 = vsyncpa [#allocation3], 0  ;;  %s103_s0 = inlined_call_operand.hbm [shape: f32[8,128], index: 0, kind: input, shape index: {}]   ;;  %s104_s1 = inlined_call_operand.hbm [shape: f32[8,128], index: 1, kind: output, shape index: {}]  }
   0x1   :  { %7 = vsyncpa [#allocation4], 0  ;;  %s85_s6 = smov [#allocation2]  }
   0x2   :  { %s14_s7 = sshll.u32 %s85_s6, 4  ;;  %s15_s7 = int_to_ptr.vmem [resolvable:$true] %s14_s7 }
   0x3   :  { %s49_s8 = scalar_lea.vmem %s15_s7, 128  ;;  %p54_p1 = scmp.lt.s32.totalorder %s15_s7, %s15_s7 }
   0x4   :  { %p50_p0 = scmp.ne.s32.totalorder %s15_s7, %s49_s8  ;;  %p55_p2 = scmp.lt.s32.totalorder %s49_s8, %s49_s8 }
   0x6   :  { %p56_p3 = por %p55_p2, %p54_p1 }
   0x8   :  { %p57_p4 = pnand %p56_p3, %p50_p0 }
   0xa   :  { %60 = shalt.err (!%p57_p4)
}
   0xb   :  { %17 = dma.hbm_to_vmem [thread:$0]  %s103_s0, 128, %s15_s7, [#allocation3]  }
   0xc   :  { %81 = dma.done.wait [#allocation3], 128  }
   0xd   :  { %82 = vsyncadd [#allocation3], 4294967168  ;;  %s86_s11 = smov [#allocation5]   ;;  %v21_v0 = vld [vmem:[#allocation2] sm:$0xff] }
   0xe   :  { %s30_s12 = sshll.u32 %s86_s11, 4  ;;  %v22_v1 = vrot.slane %v21_v0, 7  ;;  %s31_s12 = int_to_ptr.vmem [resolvable:$true] %s30_s12 }
   0xf   :  { %s61_s13 = scalar_lea.vmem %s31_s12, 128  ;;  %p66_p6 = scmp.lt.s32.totalorder %s31_s12, %s31_s12 }
  0x10   :  { %23 = vst [vmem:[#allocation5] sm:$0xff] %v22_v1  ;;  %p62_p5 = scmp.ne.s32.totalorder %s31_s12, %s61_s13  ;;  %p67_p7 = scmp.lt.s32.totalorder %s61_s13, %s61_s13 }
  0x12   :  { %p68_p8 = por %p67_p7, %p66_p6 }
  0x14   :  { %p69_p9 = pnand %p68_p8, %p62_p5 }
  0x16   :  { %72 = shalt.err (!%p69_p9)
}
  0x17   :  { %33 = dma.vmem_to_hbm [thread:$0]  %s31_s12, 128, %s104_s1, [#allocation4]  }
  0x18   :  { %83 = dma.done.wait [#allocation4], 128  }
  0x19   :  { %84 = vsyncadd [#allocation4], 4294967168 }
  0x1a   :  { %37 = vsyncpa [#allocation3], 1 }
  0x1b   :  { %38 = vsyncpa [#allocation4], 1 }

</bundles_post_ra>
